<compile_context>
chip_gen: v6e
topology: v6e:2x2x1
jax: 0.10.0
libtpu: 0.0.40
codegen_flags: <defaults>
</compile_context>

<pallas_src>
import jax
import jax.numpy as jnp
from jax.experimental import pallas as pl
from jax.experimental.pallas import tpu as pltpu


def _round_up(x, m):
    return ((x + m - 1) // m) * m


def _patch_embed_gemm_kernel(x_ref, w_ref, b_ref, o_ref):
    # x_ref: (tm, K) compute_dtype   -- one tile of flattened patches
    # w_ref: (E, K)  compute_dtype   -- native Conv2d layout flattened, resident
    # b_ref: (1, E)  f32             -- resident
    # o_ref: (tm, E) out_dtype
    acc = jax.lax.dot_general(
        x_ref[...], w_ref[...],
        dimension_numbers=(((1,), (1,)), ((), ())),   # contract on K (trans_b form)
        preferred_element_type=jnp.float32)
    o_ref[...] = (acc + b_ref[...]).astype(o_ref.dtype)


def patch_embed(x, weight, bias, patch_size, *,
                compute_dtype=jnp.bfloat16, out_dtype=None, tm=1024):
    """
    x       : (B, C, H, W)   (NCHW, same as PyTorch)
    weight  : (E, C, ph, pw) (PyTorch Conv2d weight layout)
    bias    : (E,)
    compute_dtype : MXU operand dtype (bf16 default; accumulation is always f32)
    out_dtype     : output dtype (default: x.dtype); pass bf16 for bf16 models
    returns : (B, num_patches, E)
    """
    B, C, H, W = x.shape
    E = weight.shape[0]
    ph, pw = patch_size
    assert H % ph == 0 and W % pw == 0, "image size must be divisible by patch size"
    Hp, Wp = H // ph, W // pw
    num_patches = Hp * Wp
    K = C * ph * pw
    M = B * num_patches
    out_dtype = x.dtype if out_dtype is None else out_dtype

    # --- glue: patch extraction. Cast FIRST so XLA fuses the convert into the
    # transpose and the materialized (M, K) intermediate is compute_dtype (half
    # the HBM bytes of the old f32 path), and no separate astype pass exists.
    xc = x.astype(compute_dtype)
    patches = xc.reshape(B, C, Hp, ph, Wp, pw)
    patches = jnp.transpose(patches, (0, 2, 4, 1, 3, 5)).reshape(M, K)

    # Conv weight kept in native (E, K) layout (flatten order (c, i, j) matches the
    # patches columns); no wrapper transpose. Bias stays f32 for the epilogue.
    w2d = weight.reshape(E, K).astype(compute_dtype)
    b2d = bias.reshape(1, E).astype(jnp.float32)

    # --- M tiling: big tiles amortize the ~0.35us per-step overhead; keep >= 2
    # grid steps for medium M so v7x's second TensorCore gets work.
    if M <= 256:
        tm_eff = M                                        # single small block
    else:
        tm_eff = min(tm, _round_up((M + 1) // 2, 256))    # >= 2 steps, 256-aligned
    grid = (pl.cdiv(M, tm_eff),)

    cbytes = jnp.dtype(compute_dtype).itemsize
    obytes = jnp.dtype(out_dtype).itemsize
    # Double-buffered patch tile + out tile, weight (+ possible second buffer), bias.
    vmem_need = (2 * tm_eff * K * cbytes + 2 * tm_eff * E * obytes
                 + 2 * E * K * cbytes + 2 * E * 4)
    # Above v5e's 16 MiB scoped default, comfortably under v7x's 64 MiB physical
    # at the defaults (~12 MiB working set).
    vmem_limit = int(max(vmem_need + (8 << 20), 32 << 20))

    cost = pl.CostEstimate(
        flops=2 * M * K * E,
        transcendentals=0,
        bytes_accessed=M * K * cbytes + E * K * cbytes + M * E * obytes + E * 4)

    out2d = pl.pallas_call(
        _patch_embed_gemm_kernel,
        out_shape=jax.ShapeDtypeStruct((M, E), out_dtype),
        grid_spec=pltpu.PrefetchScalarGridSpec(
            num_scalar_prefetch=0,
            grid=grid,
            in_specs=[
                # patches tile streams along M (double-buffered by the pipeline)
                pl.BlockSpec((tm_eff, K), lambda i: (i, 0)),
                # weight / bias: constant block index -> fetched once, resident
                pl.BlockSpec((E, K), lambda i: (0, 0)),
                pl.BlockSpec((1, E), lambda i: (0, 0)),
            ],
            out_specs=pl.BlockSpec((tm_eff, E), lambda i: (i, 0)),
        ),
        compiler_params=pltpu.CompilerParams(
            # Independent M tiles -> shard across v7x's 2 TensorCores
            # (harmless no-op on single-TC v5e/v6e).
            dimension_semantics=("parallel",),
            vmem_limit_bytes=vmem_limit,
        ),
        cost_estimate=cost,
    )(patches, w2d, b2d)

    return out2d.reshape(B, num_patches, E)


if __name__ == "__main__":
    # Small, shape-consistent config: img 16x16, patch 4x4, 4 in-channels, 32-dim embed.
    B, C, H, W = 2, 4, 16, 16
    ph, pw = 4, 4
    E = 32

    key = jax.random.PRNGKey(0)
    kx, kw, kb = jax.random.split(key, 3)
    x = jax.random.normal(kx, (B, C, H, W), dtype=jnp.float32)
    weight = jax.random.normal(kw, (E, C, ph, pw), dtype=jnp.float32) * 0.02
    bias = jax.random.normal(kb, (E,), dtype=jnp.float32) * 0.02

    # Reference: XLA conv (same semantics as the PyTorch module).
    ref = jax.lax.conv_general_dilated(
        x, weight, window_strides=(ph, pw), padding="VALID",
        dimension_numbers=("NCHW", "OIHW", "NCHW"),
    ) + bias.reshape(1, E, 1, 1)
    ref = ref.reshape(B, E, -1).transpose(0, 2, 1)  # flatten(2).transpose(1,2)

    num_patches = (H // ph) * (W // pw)

    # Exactness check: f32 operands, f32 output (tight tolerance).
    out_f32 = patch_embed(x, weight, bias, (ph, pw), compute_dtype=jnp.float32)
    out_f32 = jax.block_until_ready(out_f32)
    assert out_f32.shape == (B, num_patches, E)
    assert out_f32.dtype == x.dtype
    assert jnp.allclose(out_f32, ref, atol=1e-4, rtol=1e-4)

    # Default path: bf16 MXU operands (f32 accumulation), f32 output.
    out_def = patch_embed(x, weight, bias, (ph, pw))
    out_def = jax.block_until_ready(out_def)
    assert out_def.shape == (B, num_patches, E)
    assert jnp.allclose(out_def, ref, atol=2e-2, rtol=2e-2)

    # bf16 output path (for bf16 downstream activations): halves the output write.
    out_bf16 = patch_embed(x, weight, bias, (ph, pw), out_dtype=jnp.bfloat16)
    out_bf16 = jax.block_until_ready(out_bf16)
    assert out_bf16.dtype == jnp.bfloat16
    assert jnp.allclose(out_bf16.astype(jnp.float32), ref, atol=3e-2, rtol=3e-2)

    print("KERNEL_OK")
</pallas_src>

<mosaic_0001>
module attributes {stable_mosaic.version = 11 : i64} {
  func.func @_patch_embed_gemm_kernel(%arg0: i32, %arg1: memref<32x64xf32, #tpu.memory_space<vmem>>, %arg2: memref<32x64xf32, #tpu.memory_space<vmem>>, %arg3: memref<1x32xf32, #tpu.memory_space<vmem>>, %arg4: memref<32x32xf32, #tpu.memory_space<vmem>>) attributes {dimension_semantics = [#tpu.dimension_semantics<parallel>], iteration_bounds = array<i64: 1>, scalar_prefetch = 0 : i64, scratch_operands = 0 : i64, tpu.core_type = #tpu.core_type<tc>, window_params = [{transform_indices = @transform_0, window_bounds = array<i64: 32, 64>}, {pipeline_mode = #tpu.pipeline_mode<synchronous>, transform_indices = @transform_1, window_bounds = array<i64: 32, 64>}, {pipeline_mode = #tpu.pipeline_mode<synchronous>, transform_indices = @transform_2, window_bounds = array<i64: 1, 32>}, {transform_indices = @transform_3, window_bounds = array<i64: 32, 32>}]} {
    %c0 = arith.constant 0 : index
    %c0_0 = arith.constant 0 : index
    %0 = vector.load %arg1[%c0, %c0_0] : memref<32x64xf32, #tpu.memory_space<vmem>>, vector<32x64xf32>
    %c0_1 = arith.constant 0 : index
    %c0_2 = arith.constant 0 : index
    %1 = vector.load %arg2[%c0_1, %c0_2] : memref<32x64xf32, #tpu.memory_space<vmem>>, vector<32x64xf32>
    %cst = arith.constant dense<0.000000e+00> : vector<32x32xf32>
    %2 = tpu.matmul %0, %1, %cst {dimension_numbers = #tpu.dot_dimension_numbers<[1], [1], [0], [0], [0, 0, 1, 0], [], []>} : vector<32x64xf32>, vector<32x64xf32>, vector<32x32xf32> -> vector<32x32xf32>
    %c0_3 = arith.constant 0 : index
    %c0_4 = arith.constant 0 : index
    %3 = vector.load %arg3[%c0_3, %c0_4] : memref<1x32xf32, #tpu.memory_space<vmem>>, vector<1x32xf32>
    %4 = vector.broadcast %3 : vector<1x32xf32> to vector<32x32xf32>
    %5 = arith.addf %2, %4 : vector<32x32xf32>
    %c0_5 = arith.constant 0 : index
    %c0_6 = arith.constant 0 : index
    %6 = vector.load %arg4[%c0_5, %c0_6] : memref<32x32xf32, #tpu.memory_space<vmem>>, vector<32x32xf32>
    tpu.vector_store %arg4[%c0_5, %c0_6], %5 {strides = array<i32>} : memref<32x32xf32, #tpu.memory_space<vmem>>, vector<32x32xf32>,
    return
  }
  func.func @transform_0(%arg0: i32) -> (i32, i32) {
    %c0_i32 = arith.constant 0 : i32
    %c0_i32_0 = arith.constant 0 : i32
    return %arg0, %c0_i32 : i32, i32
  }
  func.func @transform_1(%arg0: i32) -> (i32, i32) {
    %c0_i32 = arith.constant 0 : i32
    %c0_i32_0 = arith.constant 0 : i32
    %c0_i32_1 = arith.constant 0 : i32
    return %c0_i32, %c0_i32_0 : i32, i32
  }
  func.func @transform_2(%arg0: i32) -> (i32, i32) {
    %c0_i32 = arith.constant 0 : i32
    %c0_i32_0 = arith.constant 0 : i32
    %c0_i32_1 = arith.constant 0 : i32
    return %c0_i32, %c0_i32_0 : i32, i32
  }
  func.func @transform_3(%arg0: i32) -> (i32, i32) {
    %c0_i32 = arith.constant 0 : i32
    %c0_i32_0 = arith.constant 0 : i32
    return %arg0, %c0_i32 : i32, i32
  }
}

</mosaic_0001>

<bundles_post_ra>
// kernel: tpu_custom_call.1
= control target key start
LH: loop header
LB: loop body
LE: loop exit
PB: predicated region body
PF: predicated region fallthrough
CT: control target
= control target key end

     0   :  { %8 = vsyncpa [#allocation3], 0  ;;  %s367_s0 = inlined_call_operand.hbm [shape: f32[32,64], index: 0, kind: input, shape index: {}]   ;;  %s368_s1 = inlined_call_operand.hbm [shape: f32[32,64], index: 1, kind: input, shape index: {}]   ;;  %s369_s2 = inlined_call_operand.vmem [shape: f32[1,32], index: 2, kind: input, shape index: {}]   ;;  %s370_s3 = inlined_call_operand.hbm [shape: f32[32,32], index: 3, kind: output, shape index: {}]  }
   0x1   :  { %9 = vsyncpa [#allocation6], 0 }
   0x2   :  { %10 = vsyncpa [#allocation4], 0  ;;  %s301_s12 = smov [#allocation2]  }
   0x3   :  { %s16_s13 = sshll.u32 %s301_s12, 4  ;;  %s17_s13 = int_to_ptr.vmem [resolvable:$true] %s16_s13 }
   0x4   :  { %s243_s14 = scalar_lea.vmem %s17_s13, 512  ;;  %p248_p1 = scmp.lt.s32.totalorder %s17_s13, %s17_s13 }
   0x5   :  { %p244_p0 = scmp.ne.s32.totalorder %s17_s13, %s243_s14  ;;  %p249_p2 = scmp.lt.s32.totalorder %s243_s14, %s243_s14 }
   0x7   :  { %p250_p3 = por %p249_p2, %p248_p1 }
   0x9   :  { %p251_p4 = pnand %p250_p3, %p244_p0 }
   0xb   :  { %254 = shalt.err (!%p251_p4)
}
   0xc   :  { %s302_s15 = smov 128   ;;  %s303_s16 = smov 8  }
   0xd   :  { %22 = dma.hbm_to_vmem [thread:$0]  %s367_s0, 512, %s17_s13, [#allocation3], %s302_s15, %s302_s15, %s303_s16  }
   0xe   :  { %s304_s19 = smov [#allocation5]  }
   0xf   :  { %s28_s20 = sshll.u32 %s304_s19, 4  ;;  %s29_s20 = int_to_ptr.vmem [resolvable:$true] %s28_s20 }
  0x10   :  { %s263_s21 = scalar_lea.vmem %s29_s20, 512  ;;  %p268_p6 = scmp.lt.s32.totalorder %s29_s20, %s29_s20 }
  0x11   :  { %p264_p5 = scmp.ne.s32.totalorder %s29_s20, %s263_s21  ;;  %p269_p7 = scmp.lt.s32.totalorder %s263_s21, %s263_s21 }
  0x13   :  { %p270_p8 = por %p269_p7, %p268_p6 }
  0x15   :  { %p271_p9 = pnand %p270_p8, %p264_p5 }
  0x17   :  { %274 = shalt.err (!%p271_p9)
}
  0x18   :  { %34 = dma.hbm_to_vmem [thread:$0]  %s368_s1, 512, %s29_s20, [#allocation6], %s302_s15, %s302_s15, %s303_s16  }
  0x19   :  { %295 = dma.done.wait [#allocation3], 512  }
  0x1a   :  { %296 = vsyncadd [#allocation3], 4294966784 }
  0x1b   :  { %297 = dma.done.wait [#allocation6], 512  }
  0x1c   :  { %298 = vsyncadd [#allocation6], 4294966784  ;;  %vm58_vm0 = vcmask 523264   ;;  %v50_v0 = vld [vmem:[#allocation5 + $0x18] sm:$0xff]  ;;  %v49_v1 = vld [vmem:[#allocation5 + $0x10] sm:$0xff]  ;;  %vm168_vm1 = vcmask 261120  }
  0x1d   :  { %208 = vmatprep.subr.msk.mxu0 %vm58_vm0, %v50_v0  ;;  %222 = vmatprep.subr.msk.mxu1 %vm58_vm0, %v50_v0  ;;  %v43_v2 = vld [vmem:[#allocation2] sm:$0xff]  ;;  %v45_v3 = vld [vmem:[#allocation2 + $0x10] sm:$0xff]  ;;  %v48_v4 = vld [vmem:[#allocation5 + $0x8] sm:$0xff]  ;;  %s305_s24 = smov [#allocation7]  }
  0x1e   :  { %209 = vmatpush3.xpose.msk.msra.mxu0 %vm58_vm0, %v50_v0  ;;  %226 = vmatpush3.xpose.msk.msra.mxu1 %vm58_vm0, %v50_v0  ;;  %v47_v5 = vld [vmem:[#allocation5] sm:$0xff]  ;;  %v44_v6 = vld [vmem:[#allocation2 + $0x8] sm:$0xff]  ;;  %v46_v7 = vld [vmem:[#allocation2 + $0x18] sm:$0xff]  ;;  %s178_s25 = sshll.u32 %s305_s24, 4  ;;  %s179_s25 = int_to_ptr.vmem [resolvable:$true] %s178_s25 }
  0x1f   :  { %210 = vmatprep.subr.msk.mxu0 %vm58_vm0, %v49_v1  ;;  %223 = vmatprep.subr.msk.mxu1 %vm58_vm0, %v49_v1  ;;  %v191_v8 = vld [vmem:[%s369_s2] ss:$0 sm:$0xff]  ;;  %s275_s26 = scalar_lea.vmem %s179_s25, 512  ;;  %p280_p11 = scmp.lt.s32.totalorder %s179_s25, %s179_s25 }
  0x20   :  { %216 = vmatprep.mubr.msk.f32.mxu0 %vm58_vm0, %v43_v2  ;;  %219 = vmatprep.mubr.msk.f32.mxu1 %vm58_vm0, %v45_v3  ;;  %p276_p10 = scmp.ne.s32.totalorder %s179_s25, %s275_s26  ;;  %p281_p12 = scmp.lt.s32.totalorder %s275_s26, %s275_s26 }
  0x22   :  { %211 = vmatpush3.xpose.msk.msra.mxu0 %vm58_vm0, %v49_v1  ;;  %227 = vmatpush3.xpose.msk.msra.mxu1 %vm58_vm0, %v49_v1  ;;  %p282_p13 = por %p281_p12, %p280_p11 }
  0x23   :  { %212 = vmatprep.subr.msk.mxu0 %vm58_vm0, %v48_v4  ;;  %224 = vmatprep.subr.msk.mxu1 %vm58_vm0, %v48_v4 }
  0x24   :  { %p283_p0 = pnand %p282_p13, %p276_p10 }
  0x26   :  { %213 = vmatpush3.xpose.msk.msra.mxu0 %vm58_vm0, %v48_v4  ;;  %228 = vmatpush3.xpose.msk.msra.mxu1 %vm58_vm0, %v48_v4 }
  0x27   :  { %214 = vmatprep.subr.msk.mxu0 %vm58_vm0, %v47_v5  ;;  %225 = vmatprep.subr.msk.mxu1 %vm58_vm0, %v47_v5 }
  0x2a   :  { %215 = vmatpush3.xpose.msk.msra.mxu0 %vm58_vm0, %v47_v5  ;;  %229 = vmatpush3.xpose.msk.msra.mxu1 %vm58_vm0, %v47_v5 }
  0x2d   :  { %217 = vmatmul.mubr.msk.f32.vlgmr.msra.gmra.mxu0 %vm58_vm0, %v44_v6  ;;  %220 = vmatmul.mubr.msk.f32.vlgmr.msra.gmra.mxu1 %vm58_vm0, %v46_v7 }
  0xed   :  { %v218_v9 = vpop.f32.mrf.mxu0  ;;  %v221_v10 = vpop.f32.mrf.mxu1 }
  0xee   :  { %v155_v11 = vadd.f32 %v218_v9, %v191_v8  ;;  %v165_v12 = vadd.f32 %v221_v10, %v191_v8 }
  0xef   :  { %v149_v13 = vpop.f32.mrf.mxu0  ;;  %v159_v14 = vpop.f32.mrf.mxu1 }
  0xf0   :  { %170 = vst.msk [vmem:[#allocation7 + $0x8] sm:$0xff] %vm168_vm1, %v155_v11  ;;  %172 = vst.msk [vmem:[#allocation7 + $0x18] sm:$0xff] %vm168_vm1, %v165_v12  ;;  %v150_v15 = vadd.f32 %v191_v8, %v149_v13  ;;  %v160_v16 = vadd.f32 %v191_v8, %v159_v14 }
  0xf2   :  { %169 = vst.msk [vmem:[#allocation7] sm:$0xff] %vm168_vm1, %v150_v15  ;;  %171 = vst.msk [vmem:[#allocation7 + $0x10] sm:$0xff] %vm168_vm1, %v160_v16 }
  0xf3   :  { %286 = shalt.err (!%p283_p0)
}
  0xf4   :  { %184 = dma.vmem_to_hbm [thread:$0]  %s179_s25, 512, %s370_s3, [#allocation4], %s302_s15, %s302_s15, %s303_s16  }
  0xf5   :  { %299 = dma.done.wait [#allocation4], 512  }
  0xf6   :  { %300 = vsyncadd [#allocation4], 4294966784 }
  0xf7   :  { %188 = vsyncpa [#allocation3], 1 }
  0xf8   :  { %189 = vsyncpa [#allocation6], 1 }
  0xf9   :  { %190 = vsyncpa [#allocation4], 1 }

</bundles_post_ra>
